<compile_context>
chip_gen: v7x
topology: tpu7x:2x2x1
jax: 0.10.0
libtpu: 0.0.40
codegen_flags: <defaults>
</compile_context>

<pallas_src>
import jax
import jax.numpy as jnp
from jax.experimental import pallas as pl
from jax.experimental.pallas import tpu as pltpu


def _maxpool_transpose_kernel(x_ref, o_ref):
    """x_ref: (1, TC, TH, TW) NCHW tile  ->  o_ref: (1, TH, TC//2, TW//2)."""
    _, tc, th, tw = x_ref.shape
    c2, w2 = tc // 2, tw // 2

    x = x_ref[0]                                      # (TC, TH, TW)  lane = W

    # 1) Channel-pair max first: a pure leading-dim pairwise max (reshape on leading
    #    dims is free vreg indexing, max is VALU) that halves the data before any
    #    relayout work.
    xc = x.reshape(c2, 2, th, tw)
    y = jnp.maximum(xc[:, 0], xc[:, 1])               # (C2, TH, TW)

    # 2) W-pair max.
    # TODO(synk): the XLU-minimal form keeps lane=W the whole time via
    #   jnp.maximum(y[..., 0::2], y[..., 1::2]);
    # stride-2 *lane* slices / lane deinterleaves do not reliably lower in Mosaic for
    # all dtypes, so we keep the transpose-to-sublane formulation, which is known to
    # compile and run on every generation: move W off the lane dim, then reduce
    # adjacent sublane pairs.
    yt = jnp.swapaxes(y, 1, 2)                        # (C2, TW, TH)  lane = TH
    z = jnp.max(yt.reshape(c2, w2, 2, th), axis=2)    # (C2, W2, TH)

    # 3) Quarter-size relayout to the lane-dense output layout (TH, C2, W2):
    #    a minor-dims transpose + a leading<->sublane einshape (both XLU, which has
    #    slack in this bandwidth-bound kernel once the pooled data is quarter-size).
    zt = jnp.swapaxes(z, 1, 2)                        # (C2, TH, W2)  lane = W2
    o_ref[0] = pltpu.einshape("chw->hcw", zt)         # (TH, C2, W2)


def _pick_tiles(c, h, w, itemsize, target_bytes):
    """Choose (tc, th, tw) for the (1, tc, th, tw) input block.

    Constraints (Pallas (8,128) rule on the last two dims of every BlockSpec + even
    2x2 pooling window), with dtype-aware sublane multiples (sub-32-bit dtypes pack
    along sublanes):
      input  block (1, tc, th, tw):      th   mult of `sub`  or th == h
                                         tw   mult of 128    or tw == w
      output block (1, th, tc/2, tw/2):  tc/2 mult of `sub`  or tc == c
                                         tw/2 mult of 128    or tw == w
    so: tc in {c} u {multiples of 2*sub dividing c}
        th in {h} u {multiples of   sub dividing h}
        tw in {w} u {multiples of   256 dividing w}   (keeps w2 a multiple of 128)

    Preference among candidates that fit `target_bytes`:
      1. tc == c  -> each output block is one contiguous HBM region (single unmasked
         write DMA per step; biggest relative win on v5e's write stream),
      2. tw == w  -> longest contiguous input runs / fewest DMA descriptors,
      3. largest block -> amortizes the ~0.35 us fixed per-grid-step cost.
    If even the smallest legal block exceeds the target, the smallest one is returned
    and the caller raises vmem_limit_bytes to fit it.
    """
    sub = {4: 8, 2: 16, 1: 32}.get(itemsize, 8)

    def _cands(dim, mult):
        out = {dim}
        m = mult
        while m < dim:
            if dim % m == 0:
                out.add(m)
            m += mult
        return sorted(out)

    tc_cands = _cands(c, 2 * sub)      # tc//2 keeps the packed sublane multiple
    th_cands = _cands(h, sub)
    tw_cands = _cands(w, 256)          # tw//2 stays a multiple of 128

    def _bytes(tile):
        tc, th, tw = tile
        return tc * th * tw * itemsize

    best, best_key = None, None
    for tc in tc_cands:
        for th in th_cands:
            for tw in tw_cands:
                b = _bytes((tc, th, tw))
                if b > target_bytes:
                    continue
                key = (tc == c, tw == w, b)
                if best_key is None or key > best_key:
                    best, best_key = (tc, th, tw), key
    if best is None:
        # Nothing fits the target (e.g. huge W with no 256-divisor): fall back to the
        # smallest legal block; the wrapper bumps the VMEM limit to cover it.
        best = min(((tc, th, tw) for tc in tc_cands
                    for th in th_cands for tw in tw_cands), key=_bytes)
    return best


def _default_block_bytes_target():
    """Per-generation input-block size (amortize the ~0.35 us per-grid-step cost)."""
    try:
        kind = jax.devices()[0].device_kind.lower()
    except Exception:
        return 2 << 20
    if "v5 lite" in kind or "v5e" in kind or "v5lite" in kind:
        return 1 << 20          # ~0.8 TB/s: a ~1.25 MiB read+write step is ~1.6 us
    return 2 << 20              # v6e/v7x: keep per-step DMA >= ~1 us (~85%+ roofline)


def image_resize_forward(x, *, block_bytes_target=None,
                         vmem_limit_bytes=32 * 1024 * 1024):
    """x: [N, C, H, W]. Returns MaxPool2d(2,2)(transpose(x,1,2)) = [N, H, C//2, W//2]."""
    n, c, h, w = x.shape
    assert c % 2 == 0 and w % 2 == 0, "pooled dims (C, W) must be even"
    c2, w2 = c // 2, w // 2

    itemsize = jnp.dtype(x.dtype).itemsize
    if block_bytes_target is None:
        block_bytes_target = _default_block_bytes_target()

    tc, th, tw = _pick_tiles(c, h, w, itemsize, block_bytes_target)
    tc2, tw2 = tc // 2, tw // 2
    blk_bytes = tc * th * tw * itemsize
    # Double-buffered input + output + in-kernel temporaries.  Keep the explicit
    # 32 MiB floor (v5e's scoped default is only 16 MiB; v7x physical VMEM is 64 MiB)
    # and only raise it if the picked block actually needs more.
    vmem_limit_bytes = max(vmem_limit_bytes, 4 * blk_bytes + (2 << 20))

    # Large, even H axis first so v7x can cleanly split the grid across its two
    # TensorCores even when tc == c and n == 1.  (v5e/v6e: single TC, order-neutral.)
    grid = (h // th, w // tw, n, c // tc)

    in_bytes = n * c * h * w * itemsize
    cost = pl.CostEstimate(
        flops=3 * n * c2 * h * w2,          # 3 maxima per output element
        transcendentals=0,
        bytes_accessed=in_bytes + in_bytes // 4,
    )

    return pl.pallas_call(
        _maxpool_transpose_kernel,
        out_shape=jax.ShapeDtypeStruct((n, h, c2, w2), x.dtype),
        grid=grid,
        in_specs=[pl.BlockSpec((1, tc, th, tw),
                               lambda hi, wi, ni, ci: (ni, ci, hi, wi))],
        out_specs=pl.BlockSpec((1, th, tc2, tw2),
                               lambda hi, wi, ni, ci: (ni, hi, ci, wi)),
        compiler_params=pltpu.CompilerParams(
            # No reduction axis: every grid step is independent.
            dimension_semantics=("parallel", "parallel", "parallel", "parallel"),
            vmem_limit_bytes=vmem_limit_bytes,
        ),
        cost_estimate=cost,
    )(x)


if __name__ == "__main__":
    key = jax.random.PRNGKey(0)
    N, C, H, W = 2, 4, 16, 16
    x = jax.random.normal(key, (N, C, H, W), dtype=jnp.float32)

    z = image_resize_forward(x)
    jax.block_until_ready(z)

    # pure-JAX reference of the PyTorch forward
    xt = jnp.transpose(x, (0, 2, 1, 3))                           # [N, H, C, W]
    ref = jnp.max(xt.reshape(N, H, C // 2, 2, W // 2, 2), axis=(3, 5))

    assert z.shape == (N, H, C // 2, W // 2), z.shape
    assert z.dtype == x.dtype
    assert jnp.allclose(z, ref)
    print("KERNEL_OK")
</pallas_src>

<mosaic_0001>
module attributes {stable_mosaic.version = 11 : i64} {
  func.func @_maxpool_transpose_kernel(%arg0: i32, %arg1: i32, %arg2: i32, %arg3: i32, %arg4: memref<1x4x16x16xf32, #tpu.memory_space<vmem>>, %arg5: memref<1x16x2x8xf32, #tpu.memory_space<vmem>>) attributes {dimension_semantics = [#tpu.dimension_semantics<parallel>, #tpu.dimension_semantics<parallel>, #tpu.dimension_semantics<parallel>, #tpu.dimension_semantics<parallel>], iteration_bounds = array<i64: 1, 1, 2, 1>, scalar_prefetch = 0 : i64, scratch_operands = 0 : i64, tpu.core_type = #tpu.core_type<tc>, window_params = [{transform_indices = @transform_0, window_bounds = array<i64: 1, 4, 16, 16>}, {transform_indices = @transform_1, window_bounds = array<i64: 1, 16, 2, 8>}]} {
    %c0 = arith.constant 0 : index
    %c0_0 = arith.constant 0 : index
    %c0_1 = arith.constant 0 : index
    %c0_2 = arith.constant 0 : index
    %0 = vector.load %arg4[%c0, %c0_0, %c0_1, %c0_2] : memref<1x4x16x16xf32, #tpu.memory_space<vmem>>, vector<1x4x16x16xf32>
    %1 = vector.shape_cast %0 : vector<1x4x16x16xf32> to vector<4x16x16xf32>
    %2 = vector.shape_cast %1 : vector<4x16x16xf32> to vector<2x2x16x16xf32>
    %3 = vector.extract_strided_slice %2 {offsets = [0, 0, 0, 0], sizes = [2, 1, 16, 16], strides = [1, 1, 1, 1]} : vector<2x2x16x16xf32> to vector<2x1x16x16xf32>
    %4 = vector.shape_cast %3 : vector<2x1x16x16xf32> to vector<2x16x16xf32>
    %5 = vector.extract_strided_slice %2 {offsets = [0, 1, 0, 0], sizes = [2, 1, 16, 16], strides = [1, 1, 1, 1]} : vector<2x2x16x16xf32> to vector<2x1x16x16xf32>
    %6 = vector.shape_cast %5 : vector<2x1x16x16xf32> to vector<2x16x16xf32>
    %7 = arith.maximumf %4, %6 : vector<2x16x16xf32>
    %8 = tpu.transpose %7, [0, 2, 1] : vector<2x16x16xf32> -> vector<2x16x16xf32>
    %9 = vector.shape_cast %8 : vector<2x16x16xf32> to vector<2x8x2x16xf32>
    %cst = arith.constant dense<0xFF800000> : vector<2x8x16xf32>
    %10 = vector.multi_reduction <maximumf>, %9, %cst [2] : vector<2x8x2x16xf32> to vector<2x8x16xf32>
    %11 = tpu.transpose %10, [0, 2, 1] : vector<2x8x16xf32> -> vector<2x16x8xf32>
    %12 = tpu.transpose %11, [1, 0, 2] : vector<2x16x8xf32> -> vector<16x2x8xf32>
    %c0_3 = arith.constant 0 : index
    %c0_4 = arith.constant 0 : index
    %c0_5 = arith.constant 0 : index
    %c0_6 = arith.constant 0 : index
    %13 = vector.load %arg5[%c0_3, %c0_4, %c0_5, %c0_6] : memref<1x16x2x8xf32, #tpu.memory_space<vmem>>, vector<1x16x2x8xf32>
    %14 = vector.shape_cast %13 : vector<1x16x2x8xf32> to vector<16x2x8xf32>
    %15 = vector.shape_cast %12 : vector<16x2x8xf32> to vector<1x16x2x8xf32>
    tpu.vector_store %arg5[%c0_3, %c0_4, %c0_5, %c0_6], %15 {strides = array<i32>} : memref<1x16x2x8xf32, #tpu.memory_space<vmem>>, vector<1x16x2x8xf32>,
    return
  }
  func.func @transform_0(%arg0: i32, %arg1: i32, %arg2: i32, %arg3: i32) -> (i32, i32, i32, i32) {
    %c0_i32 = arith.constant 0 : i32
    return %arg2, %arg3, %arg0, %arg1 : i32, i32, i32, i32
  }
  func.func @transform_1(%arg0: i32, %arg1: i32, %arg2: i32, %arg3: i32) -> (i32, i32, i32, i32) {
    %c0_i32 = arith.constant 0 : i32
    return %arg2, %arg0, %arg3, %arg1 : i32, i32, i32, i32
  }
}

</mosaic_0001>

<bundles_post_ra>
// kernel: tpu_custom_call.1
= control target key start
LH: loop header
LB: loop body
LE: loop exit
PB: predicated region body
PF: predicated region fallthrough
CT: control target
= control target key end

     0   :  { %6 = vsyncpa [#allocation3], 0  ;;  %s1255_s0 = inlined_call_operand.hbm [shape: f32[2,4,16,16], index: 0, kind: input, shape index: {}]   ;;  %s1256_s1 = inlined_call_operand.vmem [shape: f32[2,16,2,8], index: 1, kind: output, shape index: {}]  }
   0x1   :  { %8 = vsyncpa [#allocation3 + $0x1], 0  ;;  %s1030_s6 = smov 0   ;;  %s1032_s7 = smov 0  }
   0x2   :  { %s1034_s8 = smov 0   ;;  %s1036_s9 = smov 0  }
   0x3   :  { %s1038_s10 = smov 0   ;;  %s1040_s11 = smov 0  }
   0x4 LB: > { %s857_s12 = sadd.s32 4294967295, %s1012_s11   ;;  %s32_s13 = sadd.s32 1, %s1008_s10  ;;  %s1012_s11 = sphi %s1040_s11, %s14_s11   ;;  %s1008_s10 = sphi %s1038_s10, %s1264_s10   ;;  %s1004_s9 = sphi %s1036_s9, %s1263_s9   ;;  %s1000_s8 = sphi %s1034_s8, %s1262_s8   ;;  %s996_s7 = sphi %s1032_s7, %s1261_s7   ;;  %s992_s6 = sphi %s1030_s6, %s1260_s6  }
   0x5   : > { %p34_p0 = scmp.ge.s32.totalorder %s32_s13, 2  ;;  %s53_s14 = sadd.s32 1, %s1000_s8 }
   0x6   : > { %p60_p1 = scmp.ne.s32.totalorder %s1000_s8, %s996_s7  ;;  %p61_p2 = scmp.eq.s32.totalorder %s1012_s11, 0 }
   0x7   : > { %s1266_s13 = smov (%p34_p0, %s32_s13), 0  ;;  %p66_p4 = scmp.ne.s32.totalorder %s996_s7, %s992_s6 }
   0x8   : > { %p1066_p3 = por %p61_p2, %p60_p1  ;;  %s44_s16 = ssub.s32 %s1008_s10, %s1266_s13 }
   0x9   : > { %p67_p5 = scmp.eq.s32.totalorder %s857_s12, 0  ;;  %p51_p6 = scmp.eq.s32.totalorder %s44_s16, 0 }
   0xa   : > { %p878_p8 = scmp.lt.s32.totalorder %s1012_s11, 2  ;;  %s122_s19 = sand.u32 1, %s1000_s8  }
   0xb   : > { %p1073_p7 = por %p67_p5, %p66_p4  ;;  %s870_s20 = sshll.u32 %s1008_s10, 10 }
   0xc   : > { %s1079_s18 = scalar_select %p51_p6, %s1000_s8, %s53_s14  }
   0xd   : > { %s861_s21 = sshll.u32 %s122_s19, 6  ;;  %s1086_s24 = scalar_lea.hbm %s1255_s0, %s870_s20 }
   0xe   : > { %s126_s25 = scalar_lea.vmem [#allocation2], %s861_s21  ;;  %p1090_p9 = pnand %p878_p8, %p1066_p3 }
   0xf   : > { %s139_s26 = sshll.u32 %s126_s25, 4  ;;  %s1096_s28 = scalar_lea.sflag [#allocation3], %s122_s19  ;;  %s1094_s26 = int_to_ptr.vmem [resolvable:$true] %s139_s26 }
  0x10   : > { %s932_s29 = scalar_lea.hbm %s1086_s24, 1024  ;;  %p934_p11 = pneg %p1090_p9 }
  0x11   : > { %p933_p10 = scmp.ne.s32.totalorder %s1086_s24, %s932_s29  ;;  %s937_s3 = scalar_lea.hbm %s1255_s0, 2048 }
  0x12   : > { %p938_p0 = scmp.lt.u32.totalorder %s1086_s24, %s1255_s0  ;;  %p939_p1 = scmp.lt.u32.totalorder %s937_s3, %s932_s29 }
  0x13   : > { %p935_p12 = pnand %p934_p11, %p933_p10  ;;  %p941_p3 = scmp.lt.u32.totalorder %s932_s29, %s1086_s24 }
  0x14   : > { %p940_p2 = por %p939_p1, %p938_p0 }
  0x15   : > { %p936_p13 = pneg %p935_p12 }
  0x16   : > { %p942_p4 = por %p941_p3, %p940_p2 }
  0x18   : > { %p943_p5 = pnand %p942_p4, %p936_p13 }
  0x1a   : > { %946 = shalt.err (!%p943_p5)
}
  0x1b   : > { %s947_s6 = scalar_lea.vmem %s1094_s26, 1024  ;;  %s1014_s12 = smov [#allocation2]  }
  0x1c   : > { %p948_p6 = scmp.ne.s32.totalorder %s1094_s26, %s947_s6  ;;  %s952_s14 = sshll.u32 %s1014_s12, 4  ;;  %s953_s14 = int_to_ptr.vmem [resolvable:$false] %s952_s14 }
  0x1d   : > { %s954_s15 = scalar_lea.vmem %s953_s14, 2048  ;;  %p955_p12 = scmp.lt.s32.totalorder %s1094_s26, %s953_s14 }
  0x1e   : > { %p950_p8 = pnand %p948_p6, %p934_p11  ;;  %p956_p0 = scmp.lt.s32.totalorder %s954_s15, %s947_s6 }
  0x20   : > { %p951_p10 = pneg %p950_p8  ;;  %p957_p1 = por %p956_p0, %p955_p12 }
  0x22   : > { %p958_p2 = pnand %p957_p1, %p951_p10 }
  0x24   : > { %961 = shalt.err (!%p958_p2)
}
  0x25   : > { %s1015_s16 = smov 128   ;;  %s1016_s19 = smov 8  }
  0x26   : > { %877 = dma.hbm_to_vmem [thread:$0]  (!%p1090_p9), %s1086_s24, 1024, %s1094_s26, %s1096_s28, %s1015_s16, %s1015_s16, %s1016_s19  }
  0x27   : > { %p864_p11 = scmp.ge.s32.totalorder %s1012_s11, 1  ;;  %p147_p13 = scmp.lt.s32.totalorder %s1012_s11, 3 }
  0x29   : > { %p148_p3 = pnand %p864_p11, %p147_p13 }
  0x2a   : > { %s153_s20 = sand.u32 (!%p148_p3), 1, %s996_s7  }
  0x2b   : > { %151 = sbr.rel (%p148_p3) target bundleno = 370 (0x172), region = 24  ;;  %s865_s21 = sshll.u32 (!%p148_p3), %s153_s20, 6 }
  0x2c   : > { %s154_s22 = scalar_lea.sflag (!%p148_p3), [#allocation3], %s153_s20  ;;  %s157_s23 = scalar_lea.vmem (!%p148_p3), [#allocation2], %s865_s21 }
  0x32   : > { %987 = dma.done.wait (%p1073_p7), %s154_s22, 1024  }
  0x33   : > { %989 = vsyncadd (%p1073_p7), %s154_s22, 4294966272  ;;  %v208_v0 = vld [vmem:[%s157_s23 + $0x20] sm:$0xff]  ;;  %v210_v1 = vld [vmem:[%s157_s23 + $0x30] sm:$0xff]  ;;  %v1017_v12 = vmov 1983009808   ;;  %v288_v14 = vlaneseq  ;;  %vm368_vm0 = vcmask 123904  }
  0x34   : > { %v204_v2 = vld [vmem:[%s157_s23] sm:$0xff]  ;;  %v214_v3 = vmax.f32 %v208_v0, %v210_v1  ;;  %v206_v4 = vld [vmem:[%s157_s23 + $0x10] sm:$0xff]  ;;  %v209_v5 = vld [vmem:[%s157_s23 + $0x28] sm:$0xff]  ;;  %v286_v13 = vunpack.c.l.s4 %v1017_v12  ;;  %vm497_vm1 = vcmask 1041409   ;;  %vm499_vm2 = vcmask 1042434   ;;  %p189_p7 = scmp.lt.s32.totalorder %s1004_s9, 1 }
  0x35   : > { %v211_v6 = vld [vmem:[%s157_s23 + $0x38] sm:$0xff]  ;;  %v212_v7 = vmax.f32 %v204_v2, %v206_v4  ;;  %v205_v8 = vld [vmem:[%s157_s23 + $0x8] sm:$0xff]  ;;  %v1131_v16 = vshrl.u32 %v288_v14, 7  ;;  %vm501_vm3 = vcmask 1043459   ;;  %vm503_vm4 = vcmask 1044484  }
  0x36   : > { %v207_v9 = vld [vmem:[%s157_s23 + $0x18] sm:$0xff]  ;;  %248 = vxpose.xlu1.b32.start [1/2] (short) (narrow) %v214_v3, 16  ;;  %v215_v10 = vmax.f32 %v209_v5, %v211_v6  ;;  %v287_v15 = vunpack.c.0.s8 %v286_v13  ;;  %vm505_vm5 = vcmask 1045509   ;;  %vm507_vm6 = vcmask 1046534   ;;  %s1268_s9 = smov (!%p189_p7, %s1004_s9), 1 }
  0x37   : > { %216 = vxpose.xlu0.b32.start [1/2] (short) (narrow) %v212_v7, 16  ;;  %v213_v11 = vmax.f32 %v205_v8, %v207_v9  ;;  %vm509_vm7 = vcmask 1047559   ;;  %s871_s17 = sshll.u32 %s1268_s9, 5  ;;  %vm716_vm8 = vcmask 58368  }
  0x38   : > { %v1134_v17 = vsub.s32 %v287_v15, %v1131_v16  ;;  %s1199_s26 = scalar_lea.vmem %s1256_s1, %s871_s17 }
  0x3a   : > { %249 = vxpose.xlu1.b32.end [2/2] (short) (narrow) %v215_v10, 16 }
  0x3b   : > { %217 = vxpose.xlu0.b32.end [2/2] (short) (narrow) %v213_v11, 16 }
  0xb6   : > { %v264_v18 = vpop.trf.xlu1 }
  0xb7   : > { %v318_v19 = vcombine.high %v264_v18, %v264_v18  ;;  %v325_v20 = vrot.slane %v264_v18, %v1134_v17  ;;  %v232_v21 = vpop.trf.xlu0 }
  0xb8   : > { %v284_v22 = vcombine.high %v232_v21, %v232_v21  ;;  %v291_v23 = vrot.slane %v232_v21, %v1134_v17 }
  0xb9   : > { %v332_v24 = vrot.slane %v318_v19, %v1134_v17  ;;  %v333_v25 = vcombine.high %v325_v20, %v325_v20  ;;  %v425_v26 = vsel %vm368_vm0, %v325_v20, -inf }
  0xba   : > { %v426_v27 = vrot.slane %v425_v26, 4  ;;  %v298_v28 = vrot.slane %v284_v22, %v1134_v17  ;;  %v299_v29 = vcombine.high %v291_v23, %v291_v23  ;;  %v369_v30 = vsel %vm368_vm0, %v291_v23, -inf  ;;  %v265_v3 = vpop.trf.xlu1 }
  0xbb   : > { %v334_v31 = vcombine.high %v332_v24, %v332_v24  ;;  %v432_v32 = vsel %vm368_vm0, %v333_v25, -inf  ;;  %v439_v33 = vsel %vm368_vm0, %v332_v24, -inf  ;;  %v370_v34 = vrot.slane %v369_v30, 4  ;;  %v233_v12 = vpop.trf.xlu0 }
  0xbc   : > { %v427_v35 = vmax.f32 %v425_v26, %v426_v27  ;;  %v433_v36 = vrot.slane %v432_v32, 4  ;;  %v440_v37 = vrot.slane %v439_v33, 4  ;;  %v300_v38 = vcombine.high %v298_v28, %v298_v28 }
  0xbd   : > { %v446_v39 = vsel %vm368_vm0, %v334_v31, -inf  ;;  %v371_v40 = vmax.f32 %v369_v30, %v370_v34  ;;  %v376_v41 = vsel %vm368_vm0, %v299_v29, -inf  ;;  %v383_v42 = vsel %vm368_vm0, %v298_v28, -inf }
  0xbe   : > { %v428_v43 = vrot.slane %v427_v35, 2  ;;  %v434_v44 = vmax.f32 %v432_v32, %v433_v36  ;;  %v441_v45 = vmax.f32 %v439_v33, %v440_v37  ;;  %v447_v46 = vrot.slane %v446_v39, 4 }
  0xbf   : > { %v372_v47 = vrot.slane %v371_v40, 2  ;;  %v377_v48 = vrot.slane %v376_v41, 4  ;;  %v384_v49 = vrot.slane %v383_v42, 4  ;;  %v390_v50 = vsel %vm368_vm0, %v300_v38, -inf }
  0xc0   : > { %v429_v51 = vmax.f32 %v427_v35, %v428_v43  ;;  %v435_v52 = vrot.slane %v434_v44, 2  ;;  %v442_v53 = vrot.slane %v441_v45, 2  ;;  %v448_v54 = vmax.f32 %v446_v39, %v447_v46 }
  0xc1   : > { %v373_v55 = vmax.f32 %v371_v40, %v372_v47  ;;  %v378_v56 = vmax.f32 %v376_v41, %v377_v48  ;;  %v385_v57 = vmax.f32 %v383_v42, %v384_v49  ;;  %v391_v58 = vrot.slane %v390_v50, 4 }
  0xc2   : > { %v430_v59 = vrot.slane %v429_v51, 1  ;;  %v436_v60 = vmax.f32 %v434_v44, %v435_v52  ;;  %v443_v61 = vmax.f32 %v441_v45, %v442_v53  ;;  %v449_v62 = vrot.slane %v448_v54, 2 }
  0xc3   : > { %v374_v63 = vrot.slane %v373_v55, 1  ;;  %v379_v0 = vrot.slane %v378_v56, 2  ;;  %v386_v1 = vrot.slane %v385_v57, 2  ;;  %v392_v2 = vmax.f32 %v390_v50, %v391_v58 }
  0xc4   : > { %v431_v4 = vmax.f32 %v429_v51, %v430_v59  ;;  %v437_v5 = vrot.slane %v436_v60, 1  ;;  %v444_v6 = vrot.slane %v443_v61, 1  ;;  %v450_v7 = vmax.f32 %v448_v54, %v449_v62 }
  0xc5   : > { %v375_v8 = vmax.f32 %v373_v55, %v374_v63  ;;  %v380_v9 = vmax.f32 %v378_v56, %v379_v0  ;;  %v387_v10 = vmax.f32 %v385_v57, %v386_v1  ;;  %v393_v11 = vrot.slane %v392_v2, 2 }
  0xc6   : > { %v438_v13 = vmax.f32 %v436_v60, %v437_v5  ;;  %v1148_v14 = vmax.f32 %v443_v61, %v444_v6  ;;  %v451_v15 = vrot.slane %v450_v7, 1  ;;  %v335_v18 = vcombine.high %v265_v3, %v265_v3 }
  0xc7   : > { %v381_v19 = vrot.slane %v380_v9, 1  ;;  %v388_v20 = vrot.slane %v387_v10, 1  ;;  %v394_v21 = vmax.f32 %v392_v2, %v393_v11  ;;  %v342_v22 = vrot.slane %v265_v3, %v1134_v17 }
  0xc8   : > { %v1151_v23 = vmax.f32 %v450_v7, %v451_v15  ;;  %v1154_v24 = vsel %vm497_vm1, %v438_v13, %v431_v4  ;;  %v349_v25 = vrot.slane %v335_v18, %v1134_v17  ;;  %v301_v26 = vcombine.high %v233_v12, %v233_v12 }
  0xc9   : > { %v382_v27 = vmax.f32 %v380_v9, %v381_v19  ;;  %v1157_v28 = vmax.f32 %v387_v10, %v388_v20  ;;  %v395_v29 = vrot.slane %v394_v21, 1  ;;  %v350_v30 = vcombine.high %v342_v22, %v342_v22 }
  0xca   : > { %v351_v31 = vcombine.high %v349_v25, %v349_v25  ;;  %v453_v32 = vsel %vm368_vm0, %v342_v22, -inf  ;;  %v467_v33 = vsel %vm368_vm0, %v349_v25, -inf  ;;  %v308_v34 = vrot.slane %v233_v12, %v1134_v17 }
  0xcb   : > { %v1162_v35 = vmax.f32 %v394_v21, %v395_v29  ;;  %v498_v36 = vsel %vm497_vm1, %v382_v27, %v375_v8  ;;  %v454_v37 = vrot.slane %v453_v32, 4  ;;  %v460_v38 = vsel %vm368_vm0, %v350_v30, -inf }
  0xcc   : > { %v461_v39 = vrot.slane %v460_v38, 4  ;;  %v468_v40 = vrot.slane %v467_v33, 4  ;;  %v474_v41 = vsel %vm368_vm0, %v351_v31, -inf  ;;  %v315_v42 = vrot.slane %v301_v26, %v1134_v17 }
  0xcd   : > { %v455_v43 = vmax.f32 %v453_v32, %v454_v37  ;;  %v475_v44 = vrot.slane %v474_v41, 4  ;;  %v316_v45 = vcombine.high %v308_v34, %v308_v34  ;;  %v397_v46 = vsel %vm368_vm0, %v308_v34, -inf }
  0xce   : > { %v462_v47 = vmax.f32 %v460_v38, %v461_v39  ;;  %v469_v48 = vmax.f32 %v467_v33, %v468_v40  ;;  %v317_v49 = vcombine.high %v315_v42, %v315_v42  ;;  %v398_v50 = vrot.slane %v397_v46, 4 }
  0xcf   : > { %v456_v51 = vrot.slane %v455_v43, 2  ;;  %v476_v52 = vmax.f32 %v474_v41, %v475_v44  ;;  %v404_v53 = vsel %vm368_vm0, %v316_v45, -inf  ;;  %v411_v54 = vsel %vm368_vm0, %v315_v42, -inf }
  0xd0   : > { %v463_v55 = vrot.slane %v462_v47, 2  ;;  %v470_v56 = vrot.slane %v469_v48, 2  ;;  %v399_v57 = vmax.f32 %v397_v46, %v398_v50  ;;  %v405_v58 = vrot.slane %v404_v53, 4 }
  0xd1   : > { %v457_v59 = vmax.f32 %v455_v43, %v456_v51  ;;  %v412_v60 = vrot.slane %v411_v54, 4  ;;  %v418_v61 = vsel %vm368_vm0, %v317_v49, -inf  ;;  %v477_v62 = vrot.slane %v476_v52, 2 }
  0xd2   : > { %v464_v63 = vmax.f32 %v462_v47, %v463_v55  ;;  %v471_v0 = vmax.f32 %v469_v48, %v470_v56  ;;  %v400_v1 = vrot.slane %v399_v57, 2  ;;  %v406_v2 = vmax.f32 %v404_v53, %v405_v58 }
  0xd3   : > { %v458_v3 = vrot.slane %v457_v59, 1  ;;  %v413_v4 = vmax.f32 %v411_v54, %v412_v60  ;;  %v419_v5 = vrot.slane %v418_v61, 4  ;;  %v478_v6 = vmax.f32 %v476_v52, %v477_v62 }
  0xd4   : > { %v465_v7 = vrot.slane %v464_v63, 1  ;;  %v401_v8 = vmax.f32 %v399_v57, %v400_v1  ;;  %v407_v9 = vrot.slane %v406_v2, 2  ;;  %v472_v10 = vrot.slane %v471_v0, 1 }
  0xd5   : > { %v459_v11 = vmax.f32 %v457_v59, %v458_v3  ;;  %v414_v12 = vrot.slane %v413_v4, 2  ;;  %v420_v13 = vmax.f32 %v418_v61, %v419_v5  ;;  %v479_v15 = vrot.slane %v478_v6, 1 }
  0xd6   : > { %v402_v18 = vrot.slane %v401_v8, 1  ;;  %v408_v19 = vmax.f32 %v406_v2, %v407_v9  ;;  %v466_v20 = vmax.f32 %v464_v63, %v465_v7  ;;  %v473_v21 = vmax.f32 %v471_v0, %v472_v10 }
  0xd7   : > { %v415_v22 = vmax.f32 %v413_v4, %v414_v12  ;;  %v480_v25 = vmax.f32 %v478_v6, %v479_v15  ;;  %v512_v26 = vsel %vm499_vm2, %v1148_v14, %v1154_v24  ;;  %v421_v27 = vrot.slane %v420_v13, 2 }
  0xd8   : > { %v403_v29 = vmax.f32 %v401_v8, %v402_v18  ;;  %v409_v30 = vrot.slane %v408_v19, 1  ;;  %v513_v31 = vsel %vm501_vm3, %v1151_v23, %v512_v26  ;;  %v500_v32 = vsel %vm499_vm2, %v1157_v28, %v498_v36 }
  0xd9   : > { %v514_v33 = vsel %vm503_vm4, %v459_v11, %v513_v31  ;;  %v416_v34 = vrot.slane %v415_v22, 1  ;;  %v422_v37 = vmax.f32 %v420_v13, %v421_v27  ;;  %v502_v38 = vsel %vm501_vm3, %v1162_v35, %v500_v32 }
  0xda   : > { %v515_v39 = vsel %vm505_vm5, %v466_v20, %v514_v33  ;;  %v410_v14 = vmax.f32 %v408_v19, %v409_v30  ;;  %v504_v24 = vsel %vm503_vm4, %v403_v29, %v502_v38  ;;  %v1018_v44 = vmov 1934713408  }
  0xdb   : > { %v516_v40 = vsel %vm507_vm6, %v473_v21, %v515_v39  ;;  %v417_v23 = vmax.f32 %v415_v22, %v416_v34  ;;  %v423_v41 = vrot.slane %v422_v37, 1  ;;  %v617_v45 = vunpack.c.l.s4 %v1018_v44 }
  0xdc   : > { %v517_v28 = vsel %vm509_vm7, %v480_v25, %v516_v40  ;;  %v506_v36 = vsel %vm505_vm5, %v410_v14, %v504_v24  ;;  %v1019_v48 = vmov 0.0  }
  0xdd   : > { %552 = vxpose.xlu1.b32.start.end [1/1] (short) (narrow) %v517_v28, 16  ;;  %v424_v42 = vmax.f32 %v422_v37, %v423_v41  ;;  %v508_v43 = vsel %vm507_vm6, %v417_v23, %v506_v36  ;;  %v618_v47 = vunpack.c.0.s8 %v617_v45 }
  0xdf   : > { %v510_v35 = vsel %vm509_vm7, %v424_v42, %v508_v43  ;;  %v621_v53 = vsub.s32 %v618_v47, %v1131_v16 }
  0xe0   : > { %520 = vxpose.xlu0.b32.start.end [1/1] (short) (narrow) %v510_v35, 16 }
 0x15d   : > { %v568_v46 = vpop.trf.xlu1 }
 0x15e   : > { %v599_v49 = vcombine.high %v568_v46, %v1019_v48  ;;  %v606_v50 = vrot.slane %v568_v46, %v1134_v17 }
 0x160   : > { %v536_v51 = vpop.trf.xlu0  ;;  %v613_v52 = vrot.slane %v599_v49, %v1134_v17 }
 0x161   : > { %v584_v54 = vcombine.high %v536_v51, %v1019_v48  ;;  %v591_v55 = vrot.slane %v536_v51, %v1134_v17  ;;  %v569_v56 = vpop.trf.xlu1 }
 0x162   : > { %v665_v57 = vcombine.high %v569_v56, %v1019_v48  ;;  %v672_v61 = vrot.slane %v569_v56, %v1134_v17 }
 0x163   : > { %v598_v58 = vrot.slane %v584_v54, %v1134_v17  ;;  %v614_v59 = vcombine.low %v591_v55, %v606_v50  ;;  %v615_v60 = vcombine.high %v591_v55, %v606_v50 }
 0x164   : > { %v537_v16 = vpop.trf.xlu0  ;;  %v679_v2 = vrot.slane %v665_v57, %v1134_v17 }
 0x165   : > { %v622_v62 = vrot.slane %v614_v59, %v621_v53  ;;  %v629_v63 = vrot.slane %v615_v60, %v621_v53  ;;  %v630_v0 = vcombine.low %v598_v58, %v613_v52  ;;  %v631_v1 = vcombine.high %v598_v58, %v613_v52 }
 0x166   : > { %v650_v3 = vcombine.high %v537_v16, %v1019_v48  ;;  %v657_v4 = vrot.slane %v537_v16, %v1134_v17 }
 0x167   : > { %v638_v5 = vrot.slane %v630_v0, %v621_v53  ;;  %v645_v6 = vrot.slane %v631_v1, %v621_v53  ;;  %v646_v7 = vcombine.high %v622_v62, %v1019_v48  ;;  %v647_v8 = vcombine.high %v629_v63, %v1019_v48  ;;  %717 = vst.msk [vmem:[%s1199_s26] sm:$0x3] %vm716_vm8, %v622_v62 }
 0x168   : > { %719 = vst.msk [vmem:[%s1199_s26 + $0x4] sm:$0x3] %vm716_vm8, %v629_v63  ;;  %v664_v9 = vrot.slane %v650_v3, %v1134_v17  ;;  %v680_v10 = vcombine.low %v657_v4, %v672_v61  ;;  %v681_v11 = vcombine.high %v657_v4, %v672_v61 }
 0x169   : > { %v648_v12 = vcombine.high %v638_v5, %v1019_v48  ;;  %v649_v13 = vcombine.high %v645_v6, %v1019_v48  ;;  %718 = vst.msk [vmem:[%s1199_s26 + $0x2] sm:$0x3] %vm716_vm8, %v646_v7  ;;  %720 = vst.msk [vmem:[%s1199_s26 + $0x6] sm:$0x3] %vm716_vm8, %v647_v8 }
 0x16a   : > { %721 = vst.msk [vmem:[%s1199_s26 + $0x8] sm:$0x3] %vm716_vm8, %v638_v5  ;;  %723 = vst.msk [vmem:[%s1199_s26 + $0xc] sm:$0x3] %vm716_vm8, %v645_v6  ;;  %v688_v15 = vrot.slane %v680_v10, %v621_v53  ;;  %v695_v18 = vrot.slane %v681_v11, %v621_v53  ;;  %v696_v17 = vcombine.low %v664_v9, %v679_v2 }
 0x16b   : > { %v697_v19 = vcombine.high %v664_v9, %v679_v2  ;;  %722 = vst.msk [vmem:[%s1199_s26 + $0xa] sm:$0x3] %vm716_vm8, %v648_v12  ;;  %724 = vst.msk [vmem:[%s1199_s26 + $0xe] sm:$0x3] %vm716_vm8, %v649_v13 }
 0x16c   : > { %v704_v20 = vrot.slane %v696_v17, %v621_v53  ;;  %v712_v22 = vcombine.high %v688_v15, %v1019_v48  ;;  %v713_v25 = vcombine.high %v695_v18, %v1019_v48  ;;  %725 = vst.msk [vmem:[%s1199_s26 + $0x10] sm:$0x3] %vm716_vm8, %v688_v15  ;;  %727 = vst.msk [vmem:[%s1199_s26 + $0x14] sm:$0x3] %vm716_vm8, %v695_v18 }
 0x16d   : > { %v711_v21 = vrot.slane %v697_v19, %v621_v53 }
 0x16e   : > { %v714_v26 = vcombine.high %v704_v20, %v1019_v48  ;;  %726 = vst.msk [vmem:[%s1199_s26 + $0x12] sm:$0x3] %vm716_vm8, %v712_v22  ;;  %728 = vst.msk [vmem:[%s1199_s26 + $0x16] sm:$0x3] %vm716_vm8, %v713_v25 }
 0x16f   : > { %v715_v27 = vcombine.high %v711_v21, %v1019_v48  ;;  %729 = vst.msk [vmem:[%s1199_s26 + $0x18] sm:$0x3] %vm716_vm8, %v704_v20  ;;  %731 = vst.msk [vmem:[%s1199_s26 + $0x1c] sm:$0x3] %vm716_vm8, %v711_v21 }
 0x170   : > { %730 = vst.msk [vmem:[%s1199_s26 + $0x1a] sm:$0x3] %vm716_vm8, %v714_v26 }
 0x171   : > { %732 = vst.msk [vmem:[%s1199_s26 + $0x1e] sm:$0x3] %vm716_vm8, %v715_v27 }
 0x172 PF: > { %s14_s11 = sadd.s32 1, %s1012_s11   ;;  %s1260_s6 = smov %s996_s7 }
 0x173   : > { %p11_p9 = scmp.ge.s32.totalorder %s14_s11, 4   ;;  %s1261_s7 = smov %s1000_s8 }
 0x174   : > { %s1262_s8 = smov %s1079_s18  ;;  %s1263_s9 = smov %s1008_s10 }
 0x175   : > { %s1264_s10 = smov %s1266_s13  ;;  %13 = sbr.rel (!%p11_p9) target bundleno = 4 (0x4), region = 64 }
 0x17c   :  { %775 = vsyncpa [#allocation3], 1 }
 0x17d   :  { %777 = vsyncpa [#allocation3 + $0x1], 1 }

</bundles_post_ra>
